<compile_context>
chip_gen: v5e
topology: v5e:2x2
jax: 0.10.0
libtpu: 0.0.40
codegen_flags: <defaults>
</compile_context>

<pallas_src>
import jax
import jax.numpy as jnp
from jax import lax
from jax.experimental import pallas as pl
from jax.experimental.pallas import tpu as pltpu


def lstm_chunk_kernel(gx_ref, whh_ref, h_out_ref, h_ref, c_ref):
    """One time-chunk of the LSTM recurrence.

    gx_ref    : (Tc*Bp, 4H) precomputed x @ W_ih^T + bias for this chunk (time-major, lane-dense)
    whh_ref   : (H, 4H)     W_hh^T (grid-invariant)
    h_out_ref : (Bp, H)     final hidden state (resident output, written on the last chunk)
    h_ref     : (Bp, H)     hidden-state carry (VMEM scratch, persists across grid steps)
    c_ref     : (Bp, H)     cell-state carry   (VMEM scratch, persists across grid steps)
    """
    Bp, H = h_ref.shape
    Tc = gx_ref.shape[0] // Bp

    # Initialize the recurrent state on the first chunk only.
    @pl.when(pl.program_id(0) == 0)
    def _():
        h_ref[...] = jnp.zeros_like(h_ref)
        c_ref[...] = jnp.zeros_like(c_ref)

    def step(t, carry):
        h, c = carry
        off = pl.multiple_of(t * Bp, Bp)                       # sublane-aligned dynamic offset
        gates = gx_ref[pl.ds(off, Bp), :] + jnp.dot(
            h, whh_ref[...], preferred_element_type=jnp.float32)   # (Bp, 4H)
        # Two full-vreg EUP passes over the whole 4H=128-lane gates tile, then slice per gate.
        sig = jax.nn.sigmoid(gates)
        tnh = jnp.tanh(gates)
        i = sig[:, 0 * H:1 * H]
        f = sig[:, 1 * H:2 * H]
        g = tnh[:, 2 * H:3 * H]
        o = sig[:, 3 * H:4 * H]
        c_new = f * c + i * g
        h_new = o * jnp.tanh(c_new)
        return h_new, c_new

    # Bounded unroll: only Tc recurrence steps are unrolled per kernel invocation.
    h_fin, c_fin = lax.fori_loop(0, Tc, step, (h_ref[...], c_ref[...]), unroll=True)
    h_ref[...] = h_fin
    c_ref[...] = c_fin

    @pl.when(pl.program_id(0) == pl.num_programs(0) - 1)
    def _():
        h_out_ref[...] = h_fin


def simple_lstm_forward(x, params, *, time_chunk=4):
    """x: (B, T, D) float32 (PyTorch batch_first layout). Returns (B, 1)."""
    B, T, D = x.shape
    w_ih, w_hh, b_ih, b_hh, fc_w, fc_b = (
        params["w_ih"], params["w_hh"], params["b_ih"], params["b_hh"],
        params["fc_w"], params["fc_b"])
    H = w_hh.shape[1]
    G = 4 * H

    # Largest divisor of T that is <= time_chunk (keeps the time grid exact, no time padding).
    Tc = max(1, min(time_chunk, T))
    while T % Tc:
        Tc -= 1
    n_chunks = T // Tc

    # Pad batch (sublane dim) to a multiple of 8 for full-sublane vregs / unmasked stores.
    Bp = max(8, ((B + 7) // 8) * 8)

    # Hoisted input projection (+ combined bias) in XLA: one lane-dense matmul over all timesteps.
    gx = jnp.einsum("btd,gd->btg", x, w_ih) + (b_ih + b_hh)       # (B, T, 4H)
    gx = jnp.transpose(gx, (1, 0, 2))                             # (T, B, 4H) time-major
    gx = jnp.pad(gx, ((0, 0), (0, Bp - B), (0, 0)))               # (T, Bp, 4H)
    gx = gx.reshape(T * Bp, G)                                    # (T*Bp, 4H) lane-dense stream

    whh_t = w_hh.T                                                # (H, 4H)

    grid_spec = pltpu.PrefetchScalarGridSpec(
        num_scalar_prefetch=0,
        grid=(n_chunks,),                                         # sequential time chunks
        in_specs=[
            pl.BlockSpec((Tc * Bp, G), lambda t: (t, 0)),         # streamed gx chunk (pipelined)
            pl.BlockSpec((H, G), lambda t: (0, 0)),               # W_hh^T, grid-invariant
        ],
        out_specs=pl.BlockSpec((Bp, H), lambda t: (0, 0)),        # resident final hidden state
        scratch_shapes=[
            pltpu.VMEM((Bp, H), jnp.float32),                     # h carry across grid steps
            pltpu.VMEM((Bp, H), jnp.float32),                     # c carry across grid steps
        ],
    )

    h_fin = pl.pallas_call(
        lstm_chunk_kernel,
        out_shape=jax.ShapeDtypeStruct((Bp, H), jnp.float32),
        grid_spec=grid_spec,
        compiler_params=pltpu.CompilerParams(
            dimension_semantics=("arbitrary",),                   # recurrence is serial over time
            vmem_limit_bytes=32 * 1024 * 1024,
        ),
    )(gx, whh_t)

    # fc(out[:, -1, :]) on the un-padded batch — trivial lane-dense work left to XLA.
    h_last = h_fin[:B]                                            # (B, H)
    return h_last @ fc_w.T + fc_b                                 # (B, 1)


def reference_forward(x, params):
    """Pure-JAX reference mirroring torch semantics (gate order i,f,g,o)."""
    w_ih, w_hh, b_ih, b_hh, fc_w, fc_b = (
        params["w_ih"], params["w_hh"], params["b_ih"], params["b_hh"],
        params["fc_w"], params["fc_b"])
    B, T, D = x.shape
    H = w_hh.shape[1]
    h = jnp.zeros((B, H), jnp.float32)
    c = jnp.zeros((B, H), jnp.float32)

    def step(carry, x_t):
        h, c = carry
        gates = x_t @ w_ih.T + h @ w_hh.T + b_ih + b_hh
        i = jax.nn.sigmoid(gates[:, 0 * H:1 * H])
        f = jax.nn.sigmoid(gates[:, 1 * H:2 * H])
        g = jnp.tanh(gates[:, 2 * H:3 * H])
        o = jax.nn.sigmoid(gates[:, 3 * H:4 * H])
        c = f * c + i * g
        h = o * jnp.tanh(c)
        return (h, c), None

    (h, _), _ = lax.scan(step, (h, c), jnp.transpose(x, (1, 0, 2)))
    return h @ fc_w.T + fc_b


def init_params(key, input_size, hidden_size, output_size):
    """Deterministic init matching PyTorch param shapes (uniform(-1/sqrt(H), 1/sqrt(H)))."""
    k = 1.0 / jnp.sqrt(jnp.float32(hidden_size))
    keys = jax.random.split(key, 6)
    u = lambda kk, shp: jax.random.uniform(kk, shp, jnp.float32, -k, k)
    return {
        "w_ih": u(keys[0], (4 * hidden_size, input_size)),
        "w_hh": u(keys[1], (4 * hidden_size, hidden_size)),
        "b_ih": u(keys[2], (4 * hidden_size,)),
        "b_hh": u(keys[3], (4 * hidden_size,)),
        "fc_w": u(keys[4], (output_size, hidden_size)),
        "fc_b": u(keys[5], (output_size,)),
    }


if __name__ == "__main__":
    B, T, D, H, O = 2, 8, 4, 32, 1   # batch, seq, input_size, hidden_size, output_size

    key = jax.random.PRNGKey(0)
    kx, kp = jax.random.split(key)
    x = jax.random.normal(kx, (B, T, D), jnp.float32)
    params = init_params(kp, D, H, O)

    out = simple_lstm_forward(x, params)          # grid=(2,) time chunks of Tc=4 for this shape
    out = jax.block_until_ready(out)

    ref = reference_forward(x, params)
    assert out.shape == (B, O), out.shape
    assert jnp.allclose(out, ref, rtol=1e-4, atol=1e-4), (out, ref)

    print("KERNEL_OK")
</pallas_src>

<mosaic_0001>
module attributes {stable_mosaic.version = 11 : i64} {
  func.func @lstm_chunk_kernel(%arg0: i32, %arg1: memref<32x128xf32, #tpu.memory_space<vmem>>, %arg2: memref<32x128xf32, #tpu.memory_space<vmem>>, %arg3: memref<8x32xf32, #tpu.memory_space<vmem>>, %arg4: memref<8x32xf32, #tpu.memory_space<vmem>>, %arg5: memref<8x32xf32, #tpu.memory_space<vmem>>) attributes {dimension_semantics = [#tpu.dimension_semantics<arbitrary>], iteration_bounds = array<i64: 2>, scalar_prefetch = 0 : i64, scratch_operands = 2 : i64, tpu.core_type = #tpu.core_type<tc>, window_params = [{transform_indices = @transform_0, window_bounds = array<i64: 32, 128>}, {pipeline_mode = #tpu.pipeline_mode<synchronous>, transform_indices = @transform_1, window_bounds = array<i64: 32, 128>}, {pipeline_mode = #tpu.pipeline_mode<synchronous>, transform_indices = @transform_2, window_bounds = array<i64: 8, 32>}]} {
    %c0_i32 = arith.constant 0 : i32
    %0 = arith.cmpi eq, %arg0, %c0_i32 : i32
    %1 = arith.extui %0 : i1 to i32
    %c0_i32_0 = arith.constant 0 : i32
    %2 = arith.cmpi ne, %1, %c0_i32_0 : i32
    scf.if %2 {
      %cst_33 = arith.constant 0.000000e+00 : f32
      %98 = vector.broadcast %cst_33 : f32 to vector<8x32xf32>
      %c0_34 = arith.constant 0 : index
      %c0_35 = arith.constant 0 : index
      %99 = vector.load %arg4[%c0_34, %c0_35] : memref<8x32xf32, #tpu.memory_space<vmem>>, vector<8x32xf32>
      tpu.vector_store %arg4[%c0_34, %c0_35], %98 {strides = array<i32>} : memref<8x32xf32, #tpu.memory_space<vmem>>, vector<8x32xf32>,
      %cst_36 = arith.constant 0.000000e+00 : f32
      %100 = vector.broadcast %cst_36 : f32 to vector<8x32xf32>
      %c0_37 = arith.constant 0 : index
      %c0_38 = arith.constant 0 : index
      %101 = vector.load %arg5[%c0_37, %c0_38] : memref<8x32xf32, #tpu.memory_space<vmem>>, vector<8x32xf32>
      tpu.vector_store %arg5[%c0_37, %c0_38], %100 {strides = array<i32>} : memref<8x32xf32, #tpu.memory_space<vmem>>, vector<8x32xf32>,
    } else {
    }
    %c0 = arith.constant 0 : index
    %c0_1 = arith.constant 0 : index
    %3 = vector.load %arg4[%c0, %c0_1] : memref<8x32xf32, #tpu.memory_space<vmem>>, vector<8x32xf32>
    %c0_2 = arith.constant 0 : index
    %c0_3 = arith.constant 0 : index
    %4 = vector.load %arg5[%c0_2, %c0_3] : memref<8x32xf32, #tpu.memory_space<vmem>>, vector<8x32xf32>
    %c0_i32_4 = arith.constant 0 : i32
    %c8_i32 = arith.constant 8 : i32
    %5 = arith.muli %c0_i32_4, %c8_i32 : i32
    %6 = tpu.assume_multiple %5, 8 : i32
    %7 = arith.index_cast %6 : i32 to index
    %c0_5 = arith.constant 0 : index
    %8 = vector.load %arg1[%7, %c0_5] : memref<32x128xf32, #tpu.memory_space<vmem>>, vector<8x128xf32>
    %c0_6 = arith.constant 0 : index
    %c0_7 = arith.constant 0 : index
    %9 = vector.load %arg2[%c0_6, %c0_7] : memref<32x128xf32, #tpu.memory_space<vmem>>, vector<32x128xf32>
    %cst = arith.constant dense<0.000000e+00> : vector<8x128xf32>
    %10 = tpu.matmul %3, %9, %cst {dimension_numbers = #tpu.dot_dimension_numbers<[1], [0], [0], [1], [0, 0, 1, 1], [], []>} : vector<8x32xf32>, vector<32x128xf32>, vector<8x128xf32> -> vector<8x128xf32>
    %11 = arith.addf %8, %10 : vector<8x128xf32>
    %12 = arith.negf %11 : vector<8x128xf32>
    %13 = math.exp %12 : vector<8x128xf32>
    %cst_8 = arith.constant 1.000000e+00 : f32
    %14 = vector.broadcast %cst_8 : f32 to vector<8x128xf32>
    %15 = arith.addf %14, %13 : vector<8x128xf32>
    %16 = arith.divf %14, %15 : vector<8x128xf32>
    %17 = math.tanh %11 : vector<8x128xf32>
    %18 = vector.extract_strided_slice %16 {offsets = [0, 0], sizes = [8, 32], strides = [1, 1]} : vector<8x128xf32> to vector<8x32xf32>
    %19 = vector.extract_strided_slice %16 {offsets = [0, 32], sizes = [8, 32], strides = [1, 1]} : vector<8x128xf32> to vector<8x32xf32>
    %20 = vector.extract_strided_slice %17 {offsets = [0, 64], sizes = [8, 32], strides = [1, 1]} : vector<8x128xf32> to vector<8x32xf32>
    %21 = vector.extract_strided_slice %16 {offsets = [0, 96], sizes = [8, 32], strides = [1, 1]} : vector<8x128xf32> to vector<8x32xf32>
    %22 = arith.mulf %19, %4 : vector<8x32xf32>
    %23 = arith.mulf %18, %20 : vector<8x32xf32>
    %24 = arith.addf %22, %23 : vector<8x32xf32>
    %25 = math.tanh %24 : vector<8x32xf32>
    %26 = arith.mulf %21, %25 : vector<8x32xf32>
    %c1_i32 = arith.constant 1 : i32
    %c8_i32_9 = arith.constant 8 : i32
    %27 = arith.muli %c1_i32, %c8_i32_9 : i32
    %28 = tpu.assume_multiple %27, 8 : i32
    %29 = arith.index_cast %28 : i32 to index
    %c0_10 = arith.constant 0 : index
    %30 = vector.load %arg1[%29, %c0_10] : memref<32x128xf32, #tpu.memory_space<vmem>>, vector<8x128xf32>
    %c0_11 = arith.constant 0 : index
    %c0_12 = arith.constant 0 : index
    %31 = vector.load %arg2[%c0_11, %c0_12] : memref<32x128xf32, #tpu.memory_space<vmem>>, vector<32x128xf32>
    %cst_13 = arith.constant dense<0.000000e+00> : vector<8x128xf32>
    %32 = tpu.matmul %26, %31, %cst_13 {dimension_numbers = #tpu.dot_dimension_numbers<[1], [0], [0], [1], [0, 0, 1, 1], [], []>} : vector<8x32xf32>, vector<32x128xf32>, vector<8x128xf32> -> vector<8x128xf32>
    %33 = arith.addf %30, %32 : vector<8x128xf32>
    %34 = arith.negf %33 : vector<8x128xf32>
    %35 = math.exp %34 : vector<8x128xf32>
    %cst_14 = arith.constant 1.000000e+00 : f32
    %36 = vector.broadcast %cst_14 : f32 to vector<8x128xf32>
    %37 = arith.addf %36, %35 : vector<8x128xf32>
    %38 = arith.divf %36, %37 : vector<8x128xf32>
    %39 = math.tanh %33 : vector<8x128xf32>
    %40 = vector.extract_strided_slice %38 {offsets = [0, 0], sizes = [8, 32], strides = [1, 1]} : vector<8x128xf32> to vector<8x32xf32>
    %41 = vector.extract_strided_slice %38 {offsets = [0, 32], sizes = [8, 32], strides = [1, 1]} : vector<8x128xf32> to vector<8x32xf32>
    %42 = vector.extract_strided_slice %39 {offsets = [0, 64], sizes = [8, 32], strides = [1, 1]} : vector<8x128xf32> to vector<8x32xf32>
    %43 = vector.extract_strided_slice %38 {offsets = [0, 96], sizes = [8, 32], strides = [1, 1]} : vector<8x128xf32> to vector<8x32xf32>
    %44 = arith.mulf %41, %24 : vector<8x32xf32>
    %45 = arith.mulf %40, %42 : vector<8x32xf32>
    %46 = arith.addf %44, %45 : vector<8x32xf32>
    %47 = math.tanh %46 : vector<8x32xf32>
    %48 = arith.mulf %43, %47 : vector<8x32xf32>
    %c2_i32 = arith.constant 2 : i32
    %c8_i32_15 = arith.constant 8 : i32
    %49 = arith.muli %c2_i32, %c8_i32_15 : i32
    %50 = tpu.assume_multiple %49, 8 : i32
    %51 = arith.index_cast %50 : i32 to index
    %c0_16 = arith.constant 0 : index
    %52 = vector.load %arg1[%51, %c0_16] : memref<32x128xf32, #tpu.memory_space<vmem>>, vector<8x128xf32>
    %c0_17 = arith.constant 0 : index
    %c0_18 = arith.constant 0 : index
    %53 = vector.load %arg2[%c0_17, %c0_18] : memref<32x128xf32, #tpu.memory_space<vmem>>, vector<32x128xf32>
    %cst_19 = arith.constant dense<0.000000e+00> : vector<8x128xf32>
    %54 = tpu.matmul %48, %53, %cst_19 {dimension_numbers = #tpu.dot_dimension_numbers<[1], [0], [0], [1], [0, 0, 1, 1], [], []>} : vector<8x32xf32>, vector<32x128xf32>, vector<8x128xf32> -> vector<8x128xf32>
    %55 = arith.addf %52, %54 : vector<8x128xf32>
    %56 = arith.negf %55 : vector<8x128xf32>
    %57 = math.exp %56 : vector<8x128xf32>
    %cst_20 = arith.constant 1.000000e+00 : f32
    %58 = vector.broadcast %cst_20 : f32 to vector<8x128xf32>
    %59 = arith.addf %58, %57 : vector<8x128xf32>
    %60 = arith.divf %58, %59 : vector<8x128xf32>
    %61 = math.tanh %55 : vector<8x128xf32>
    %62 = vector.extract_strided_slice %60 {offsets = [0, 0], sizes = [8, 32], strides = [1, 1]} : vector<8x128xf32> to vector<8x32xf32>
    %63 = vector.extract_strided_slice %60 {offsets = [0, 32], sizes = [8, 32], strides = [1, 1]} : vector<8x128xf32> to vector<8x32xf32>
    %64 = vector.extract_strided_slice %61 {offsets = [0, 64], sizes = [8, 32], strides = [1, 1]} : vector<8x128xf32> to vector<8x32xf32>
    %65 = vector.extract_strided_slice %60 {offsets = [0, 96], sizes = [8, 32], strides = [1, 1]} : vector<8x128xf32> to vector<8x32xf32>
    %66 = arith.mulf %63, %46 : vector<8x32xf32>
    %67 = arith.mulf %62, %64 : vector<8x32xf32>
    %68 = arith.addf %66, %67 : vector<8x32xf32>
    %69 = math.tanh %68 : vector<8x32xf32>
    %70 = arith.mulf %65, %69 : vector<8x32xf32>
    %c3_i32 = arith.constant 3 : i32
    %c8_i32_21 = arith.constant 8 : i32
    %71 = arith.muli %c3_i32, %c8_i32_21 : i32
    %72 = tpu.assume_multiple %71, 8 : i32
    %73 = arith.index_cast %72 : i32 to index
    %c0_22 = arith.constant 0 : index
    %74 = vector.load %arg1[%73, %c0_22] : memref<32x128xf32, #tpu.memory_space<vmem>>, vector<8x128xf32>
    %c0_23 = arith.constant 0 : index
    %c0_24 = arith.constant 0 : index
    %75 = vector.load %arg2[%c0_23, %c0_24] : memref<32x128xf32, #tpu.memory_space<vmem>>, vector<32x128xf32>
    %cst_25 = arith.constant dense<0.000000e+00> : vector<8x128xf32>
    %76 = tpu.matmul %70, %75, %cst_25 {dimension_numbers = #tpu.dot_dimension_numbers<[1], [0], [0], [1], [0, 0, 1, 1], [], []>} : vector<8x32xf32>, vector<32x128xf32>, vector<8x128xf32> -> vector<8x128xf32>
    %77 = arith.addf %74, %76 : vector<8x128xf32>
    %78 = arith.negf %77 : vector<8x128xf32>
    %79 = math.exp %78 : vector<8x128xf32>
    %cst_26 = arith.constant 1.000000e+00 : f32
    %80 = vector.broadcast %cst_26 : f32 to vector<8x128xf32>
    %81 = arith.addf %80, %79 : vector<8x128xf32>
    %82 = arith.divf %80, %81 : vector<8x128xf32>
    %83 = math.tanh %77 : vector<8x128xf32>
    %84 = vector.extract_strided_slice %82 {offsets = [0, 0], sizes = [8, 32], strides = [1, 1]} : vector<8x128xf32> to vector<8x32xf32>
    %85 = vector.extract_strided_slice %82 {offsets = [0, 32], sizes = [8, 32], strides = [1, 1]} : vector<8x128xf32> to vector<8x32xf32>
    %86 = vector.extract_strided_slice %83 {offsets = [0, 64], sizes = [8, 32], strides = [1, 1]} : vector<8x128xf32> to vector<8x32xf32>
    %87 = vector.extract_strided_slice %82 {offsets = [0, 96], sizes = [8, 32], strides = [1, 1]} : vector<8x128xf32> to vector<8x32xf32>
    %88 = arith.mulf %85, %68 : vector<8x32xf32>
    %89 = arith.mulf %84, %86 : vector<8x32xf32>
    %90 = arith.addf %88, %89 : vector<8x32xf32>
    %91 = math.tanh %90 : vector<8x32xf32>
    %92 = arith.mulf %87, %91 : vector<8x32xf32>
    %c4_i32 = arith.constant 4 : i32
    %c0_27 = arith.constant 0 : index
    %c0_28 = arith.constant 0 : index
    %93 = vector.load %arg4[%c0_27, %c0_28] : memref<8x32xf32, #tpu.memory_space<vmem>>, vector<8x32xf32>
    tpu.vector_store %arg4[%c0_27, %c0_28], %92 {strides = array<i32>} : memref<8x32xf32, #tpu.memory_space<vmem>>, vector<8x32xf32>,
    %c0_29 = arith.constant 0 : index
    %c0_30 = arith.constant 0 : index
    %94 = vector.load %arg5[%c0_29, %c0_30] : memref<8x32xf32, #tpu.memory_space<vmem>>, vector<8x32xf32>
    tpu.vector_store %arg5[%c0_29, %c0_30], %90 {strides = array<i32>} : memref<8x32xf32, #tpu.memory_space<vmem>>, vector<8x32xf32>,
    %c1_i32_31 = arith.constant 1 : i32
    %95 = arith.cmpi eq, %arg0, %c1_i32_31 : i32
    %96 = arith.extui %95 : i1 to i32
    %c0_i32_32 = arith.constant 0 : i32
    %97 = arith.cmpi ne, %96, %c0_i32_32 : i32
    scf.if %97 {
      %c0_33 = arith.constant 0 : index
      %c0_34 = arith.constant 0 : index
      %98 = vector.load %arg3[%c0_33, %c0_34] : memref<8x32xf32, #tpu.memory_space<vmem>>, vector<8x32xf32>
      tpu.vector_store %arg3[%c0_33, %c0_34], %92 {strides = array<i32>} : memref<8x32xf32, #tpu.memory_space<vmem>>, vector<8x32xf32>,
    } else {
    }
    return
  }
  func.func @transform_0(%arg0: i32) -> (i32, i32) {
    %c0_i32 = arith.constant 0 : i32
    %c0_i32_0 = arith.constant 0 : i32
    return %arg0, %c0_i32 : i32, i32
  }
  func.func @transform_1(%arg0: i32) -> (i32, i32) {
    %c0_i32 = arith.constant 0 : i32
    %c0_i32_0 = arith.constant 0 : i32
    %c0_i32_1 = arith.constant 0 : i32
    return %c0_i32, %c0_i32_0 : i32, i32
  }
  func.func @transform_2(%arg0: i32) -> (i32, i32) {
    %c0_i32 = arith.constant 0 : i32
    %c0_i32_0 = arith.constant 0 : i32
    %c0_i32_1 = arith.constant 0 : i32
    return %c0_i32, %c0_i32_0 : i32, i32
  }
}

</mosaic_0001>

<bundles_post_ra>
// kernel: tpu_custom_call.1
= control target key start
LH: loop header
LB: loop body
LE: loop exit
PB: predicated region body
PF: predicated region fallthrough
CT: control target
= control target key end

     0   :  { %7 = vsyncpa [#allocation5], 0  ;;  %s949_s0 = inlined_call_operand.hbm [shape: f32[64,128], index: 0, kind: input, shape index: {}]   ;;  %s950_s1 = inlined_call_operand.hbm [shape: f32[32,128], index: 1, kind: input, shape index: {}]   ;;  %s951_s2 = inlined_call_operand.hbm [shape: f32[8,32], index: 2, kind: output, shape index: {}]  }
   0x1   :  { %9 = vsyncpa [#allocation5 + $0x1], 0 }
   0x2   :  { %10 = vsyncpa [#allocation8], 0 }
   0x3   :  { %11 = vsyncpa [#allocation6], 0  ;;  %s807_s9 = smov 0   ;;  %s809_s10 = smov 0  }
   0x4   :  { %s811_s11 = smov 0   ;;  %s813_s12 = smov 0  }
   0x5 LB: > { %s826_s13 = sadd.s32 4294967295, %s782_s12   ;;  %p37_p0 = scmp.ne.s32.totalorder %s774_s10, %s770_s9  ;;  %s782_s12 = sphi %s813_s12, %s958_s12   ;;  %s778_s11 = sphi %s811_s11, %s957_s11   ;;  %s774_s10 = sphi %s809_s10, %s956_s10   ;;  %s770_s9 = sphi %s807_s9, %s955_s9  }
   0x6   : > { %p38_p1 = scmp.eq.s32.totalorder %s826_s13, 0  ;;  %p530_p2 = scmp.ge.s32.totalorder %s782_s12, 1 }
   0x7   : > { %p90_p3 = scmp.lt.s32.totalorder %s782_s12, 3  ;;  %p531_p4 = scmp.ne.s32.totalorder %s826_s13, 0 }
   0x8   : > { %p835_p5 = por %p38_p1, %p37_p0  ;;  %s101_s17 = sshll.u32 %s950_s1, 4  ;;  %s102_s17 = int_to_ptr.hbm [resolvable:$true] %s101_s17 }
   0x9   : > { %p842_p6 = pnand %p530_p2, %p90_p3  ;;  %s784_s19 = smov [#allocation7]  }
   0xa   : > { %s103_s20 = sshll.u32 %s784_s19, 4  ;;  %s851_s21 = sadd.s32 1, %s782_s12   ;;  %s104_s20 = int_to_ptr.vmem [resolvable:$true] %s103_s20 }
   0xb   : > { %p567_p7 = pneg %p842_p6  ;;  %s785_s22 = smov 128  }
   0xc   : > { %s786_s23 = smov 8   ;;  %s21_s24 = ssub.s32 %s782_s12, %s851_s21 }
   0xd   : > { %p568_p8 = pnand %p567_p7, %p38_p1  ;;  %s24_s25 = sadd.s32 1, %s778_s11 }
   0xe   : > { %p22_p9 = scmp.eq.s32.totalorder %s21_s24, 0  ;;  %p31_p10 = scmp.ne.s32.totalorder %s778_s11, %s774_s10 }
   0xf   : > { %570 = dma.hbm_to_vmem [thread:$0]  (!%p568_p8), %s102_s17, 512, %s104_s20, [#allocation8], %s785_s22, %s785_s22, %s786_s23  }
  0x10   : > { %p32_p11 = scmp.eq.s32.totalorder %s782_s12, 0  ;;  %p576_p12 = scmp.lt.s32.totalorder %s782_s12, 2 }
  0x11   : > { %s864_s26 = scalar_select %p22_p9, %s778_s11, %s24_s25  }
  0x12   : > { %p33_p13 = por %p32_p11, %p31_p10  ;;  %s117_s27 = sand.u32 1, %s778_s11  }
  0x13   : > { %s533_s28 = sshll.u32 %s117_s27, 5  ;;  %s556_s29 = sshll.u32 %s782_s12, 5 }
  0x14   : > { %s126_s4 = scalar_lea.hbm %s949_s0, %s556_s29  ;;  %s121_s5 = scalar_lea.vmem [#allocation4], %s533_s28 }
  0x15   : > { %s129_s6 = sshll.u32 %s121_s5, 4  ;;  %s127_s7 = sshll.u32 %s126_s4, 4  ;;  %s130_s6 = int_to_ptr.vmem [resolvable:$true] %s129_s6  ;;  %s128_s7 = int_to_ptr.hbm [resolvable:$true] %s127_s7 }
  0x16   : > { %p871_p0 = pnand %p576_p12, %p33_p13  ;;  %s118_s9 = scalar_lea.sflag [#allocation5], %s117_s27 }
  0x17   : > { %s682_s15 = sshra.s32 %s128_s7, 4  ;;  %s689_s19 = scalar_lea.hbm %s949_s0, 64  ;;  %s683_s15 = int_to_ptr.hbm [resolvable:$true] %s682_s15 }
  0x18   : > { %s684_s16 = scalar_lea.hbm %s683_s15, 32  ;;  %p686_p3 = pneg %p871_p0 }
  0x19   : > { %p685_p2 = scmp.ne.s32.totalorder %s683_s15, %s684_s16  ;;  %p690_p9 = scmp.lt.s32.totalorder %s683_s15, %s949_s0 }
  0x1a   : > { %p691_p10 = scmp.lt.s32.totalorder %s689_s19, %s684_s16 }
  0x1b   : > { %p687_p7 = pnand %p686_p3, %p685_p2 }
  0x1c   : > { %p692_p11 = por %p691_p10, %p690_p9 }
  0x1d   : > { %p688_p8 = pneg %p687_p7 }
  0x1f   : > { %p693_p12 = pnand %p692_p11, %p688_p8 }
  0x21   : > { %696 = shalt.err (!%p693_p12)
}
  0x22   : > { %574 = dma.hbm_to_vmem [thread:$0]  (!%p871_p0), %s128_s7, 512, %s130_s6, %s118_s9, %s785_s22, %s785_s22, %s786_s23  }
  0x23   : > { %141 = sbr.rel (%p842_p6) target bundleno = 2390 (0x956), region = 28  ;;  %s143_s25 = sand.u32 (!%p842_p6), 1, %s774_s10  }
  0x24   : > { %s537_s27 = sshll.u32 (!%p842_p6), %s143_s25, 5  ;;  %s144_s28 = scalar_lea.sflag (!%p842_p6), [#allocation5], %s143_s25 }
  0x25   : > { %s891_s29 = scalar_lea.vmem (!%p842_p6), [#allocation4], %s537_s27 }
  0x28   : > { %757 = dma.done.wait (%p835_p5), %s144_s28, 512  }
  0x29   : > { %759 = vsyncadd (%p835_p5), %s144_s28, 4294966784 }
  0x2a   : > { %761 = dma.done.wait (%p38_p1), [#allocation8], 512  }
  0x2b   : > { %763 = vsyncadd (%p38_p1), [#allocation8], 4294966784  ;;  %173 = sbr.rel (%p531_p4) target bundleno = 51 (0x33), region = 40 }
  0x30   : > { %vm174_vm0 = vcmask 261120   ;;  %v787_v0 = vmov 0.0  }
  0x31   : > { %175 = vst.msk [vmem:[#allocation2] sm:$0xff] %vm174_vm0, %v787_v0 }
  0x32   : > { %176 = vst.msk [vmem:[#allocation3] sm:$0xff] %vm174_vm0, %v787_v0 }
  0x33 PF: > { %v183_v1 = vld [vmem:[#allocation7 + $0x18] sm:$0xff]  ;;  %v182_v2 = vld [vmem:[#allocation7 + $0x10] sm:$0xff]  ;;  %v181_v3 = vld [vmem:[#allocation7 + $0x8] sm:$0xff]  ;;  %vm184_vm1 = vcmask 261120   ;;  %s788_s14 = smov 64   ;;  %s789_s18 = smov 32  }
  0x34   : > { %200 = vmatpush.msra.mxu0 %v183_v1  ;;  %269 = vmatpush.msra.mxu1 %v183_v1  ;;  %v180_v4 = vld [vmem:[#allocation7] sm:$0xff]  ;;  %v542_v34 = vld [vmem:[%s891_s29 + $0x8] sm:$0xff]  ;;  %v545_v60 = vld [vmem:[%s891_s29 + $0x10] sm:$0xff]  ;;  %s790_s22 = smov 96   ;;  %p551_p1 = scmp.ne.s32.totalorder %s826_s13, 1 }
  0x35   : > { %334 = vmatpush.msra.mxu2 %v183_v1  ;;  %399 = vmatpush.msra.mxu3 %v183_v1  ;;  %v179_v6 = vld [vmem:[%s891_s29] sm:$0xff] }
  0x36   : > { %201 = vmatpush.msra.mxu0 %v182_v2  ;;  %270 = vmatpush.msra.mxu1 %v182_v2 }
  0x37   : > { %335 = vmatpush.msra.mxu2 %v182_v2  ;;  %400 = vmatpush.msra.mxu3 %v182_v2 }
  0x38   : > { %202 = vmatpush.msra.mxu0 %v181_v3  ;;  %v177_v5 = vld [vmem:[#allocation2] sm:$0xff]  ;;  %271 = vmatpush.msra.mxu1 %v181_v3 }
  0x39   : > { %336 = vmatpush.msra.mxu2 %v181_v3  ;;  %401 = vmatpush.msra.mxu3 %v181_v3  ;;  %v178_v10 = vld [vmem:[#allocation3] sm:$0xff] }
  0x3a   : > { %203 = vmatpush.msra.mxu0 %v180_v4  ;;  %272 = vmatpush.msra.mxu1 %v180_v4 }
  0x3b   : > { %540 = vmatmul.msk.f32.vlgmr.msra.gmra.mxu0 %vm184_vm1, %v177_v5  ;;  %337 = vmatpush.msra.mxu2 %v180_v4 }
  0x3c   : > { %402 = vmatpush.msra.mxu3 %v180_v4 }
  0xb8   : > { %v205_v7 = vpop.f32.mrf.mxu0 }
  0xb9   : > { %v208_v8 = vadd.f32 %v205_v7, %v179_v6 }
  0xbb   : > { %620 = vtanh.f32 %v208_v8  ;;  %v541_v11 = vmul.f32 -1.442695, %v208_v8 }
  0xbd   : > { %622 = vpow2.f32 %v541_v11 }
  0xc1   : > { %v621_v9 = vpop.eup %620 }
  0xc2   : > { %235 = vrot.lane.b32.xlu0 %v621_v9, %s788_s14 }
  0xc3   : > { %v623_v12 = vpop.eup %622 }
  0xc4   : > { %v212_v13 = vadd.f32 1.0, %v623_v12 }
  0xc6   : > { %624 = vrcp.f32 %v212_v13  ;;  %v224_v19 = vand.u32 2147483648, %v212_v13  ;;  %vm218_vm3 = vweird.f32 %v212_v13  ;;  %v222_v20 = vand.u32 2147483647, %v212_v13 }
  0xc8   : > { %v225_v22 = vor.u32 1.1754944e-38, %v224_v19  ;;  %vm223_vm5 = vcmp.eq.f32.partialorder %v222_v20, 8.507059e+37 }
  0xca   : > { %230 = vrot.lane.b32.xlu0 %v178_v10, %s789_s18 }
  0xcc   : > { %v625_v14 = vpop.eup %624 }
  0xcd   : > { %v214_v15 = vmul.f32 %v625_v14, %v212_v13  ;;  %vm219_vm2 = vweird.f32 %v625_v14 }
  0xce   : > { %vm220_vm4 = vmor %vm218_vm3, %vm219_vm2 }
  0xcf   : > { %v215_v16 = vsub.f32 1.0, %v214_v15 }
  0xd1   : > { %v216_v17 = vmul.f32 %v625_v14, %v215_v16 }
  0xd3   : > { %v217_v18 = vadd.f32 %v625_v14, %v216_v17 }
  0xd5   : > { %v221_v21 = vsel %vm220_vm4, %v625_v14, %v217_v18 }
  0xd6   : > { %v226_v24 = vsel %vm223_vm5, %v225_v22, %v221_v21  ;;  %v548_v22 = vld [vmem:[%s891_s29 + $0x18] sm:$0xff] }
 0x134   : > { %v236_v23 = vpop.permute.xlu0 %235 }
 0x135   : > { %v238_v25 = vmul.f32 %v236_v23, %v226_v24 }
 0x137   : > { %240 = vrot.lane.b32.xlu1 %v238_v25, %s789_s18 }
 0x13c   : > { %v231_v26 = vpop.permute.xlu0 %230 }
 0x13d   : > { %v233_v27 = vmul.f32 %v231_v26, %v226_v24 }
 0x1a9   : > { %v241_v28 = vpop.permute.xlu1 %240 }
 0x1aa   : > { %v243_v29 = vadd.f32 %v241_v28, %v233_v27 }
 0x1ac   : > { %626 = vtanh.f32 %v243_v29 }
 0x1b2   : > { %v627_v30 = vpop.eup %626 }
 0x1b3   : > { %246 = vrot.lane.b32.xlu1 %v627_v30, %s788_s14 }
 0x225   : > { %v247_v31 = vpop.permute.xlu1 %246 }
 0x226   : > { %v249_v32 = vmul.f32 %v247_v31, %v226_v24 }
 0x228   : > { %253 = vrot.lane.b32.xlu2 %v249_v32, %s789_s18 }
 0x282   : > { %v254_v33 = vpop.permute.xlu2 %253 }
 0x283   : > { %543 = vmatmul.msk.f32.vlgmr.msra.gmra.mxu1 %vm184_vm1, %v254_v33 }
 0x300   : > { %v274_v35 = vpop.f32.mrf.mxu1 }
 0x301   : > { %v277_v36 = vadd.f32 %v542_v34, %v274_v35 }
 0x303   : > { %628 = vtanh.f32 %v277_v36  ;;  %v544_v38 = vmul.f32 -1.442695, %v277_v36 }
 0x305   : > { %630 = vpow2.f32 %v544_v38 }
 0x309   : > { %v629_v37 = vpop.eup %628 }
 0x30a   : > { %300 = vrot.lane.b32.xlu2 %v629_v37, %s788_s14 }
 0x30b   : > { %v631_v39 = vpop.eup %630 }
 0x30c   : > { %v281_v40 = vadd.f32 1.0, %v631_v39 }
 0x30e   : > { %632 = vrcp.f32 %v281_v40  ;;  %v293_v46 = vand.u32 2147483648, %v281_v40  ;;  %vm287_vm7 = vweird.f32 %v281_v40  ;;  %v291_v47 = vand.u32 2147483647, %v281_v40 }
 0x310   : > { %v294_v49 = vor.u32 1.1754944e-38, %v293_v46  ;;  %vm292_vm9 = vcmp.eq.f32.partialorder %v291_v47, 8.507059e+37 }
 0x314   : > { %v633_v41 = vpop.eup %632 }
 0x315   : > { %v283_v42 = vmul.f32 %v633_v41, %v281_v40  ;;  %vm288_vm6 = vweird.f32 %v633_v41 }
 0x316   : > { %vm289_vm8 = vmor %vm287_vm7, %vm288_vm6 }
 0x317   : > { %v284_v43 = vsub.f32 1.0, %v283_v42 }
 0x319   : > { %v285_v44 = vmul.f32 %v633_v41, %v284_v43 }
 0x31b   : > { %v286_v45 = vadd.f32 %v633_v41, %v285_v44 }
 0x31d   : > { %v290_v48 = vsel %vm289_vm8, %v633_v41, %v286_v45 }
 0x31e   : > { %v295_v51 = vsel %vm292_vm9, %v294_v49, %v290_v48 }
 0x31f   : > { %v298_v53 = vmul.f32 %v295_v51, %v243_v29 }
 0x364   : > { %v301_v50 = vpop.permute.xlu2 %300 }
 0x365   : > { %v303_v52 = vmul.f32 %v301_v50, %v295_v51 }
 0x367   : > { %305 = vrot.lane.b32.xlu0 %v303_v52, %s789_s18 }
 0x3d9   : > { %v306_v54 = vpop.permute.xlu0 %305 }
 0x3da   : > { %v308_v55 = vadd.f32 %v306_v54, %v298_v53 }
 0x3dc   : > { %634 = vtanh.f32 %v308_v55 }
 0x3e2   : > { %v635_v56 = vpop.eup %634 }
 0x3e3   : > { %311 = vrot.lane.b32.xlu1 %v635_v56, %s788_s14 }
 0x455   : > { %v312_v57 = vpop.permute.xlu1 %311 }
 0x456   : > { %v314_v58 = vmul.f32 %v312_v57, %v295_v51 }
 0x458   : > { %318 = vrot.lane.b32.xlu2 %v314_v58, %s789_s18 }
 0x4b2   : > { %v319_v59 = vpop.permute.xlu2 %318 }
 0x4b3   : > { %546 = vmatmul.msk.f32.vlgmr.msra.gmra.mxu2 %vm184_vm1, %v319_v59 }
 0x536   : > { %v339_v61 = vpop.f32.mrf.mxu2 }
 0x537   : > { %v342_v62 = vadd.f32 %v545_v60, %v339_v61 }
 0x539   : > { %636 = vtanh.f32 %v342_v62  ;;  %v547_v0 = vmul.f32 -1.442695, %v342_v62 }
 0x53b   : > { %638 = vpow2.f32 %v547_v0 }
 0x53f   : > { %v637_v63 = vpop.eup %636 }
 0x540   : > { %365 = vrot.lane.b32.xlu0 %v637_v63, %s788_s14 }
 0x541   : > { %v639_v1 = vpop.eup %638 }
 0x542   : > { %v346_v2 = vadd.f32 1.0, %v639_v1 }
 0x544   : > { %640 = vrcp.f32 %v346_v2  ;;  %v358_v8 = vand.u32 2147483648, %v346_v2  ;;  %vm352_vm11 = vweird.f32 %v346_v2  ;;  %v356_v9 = vand.u32 2147483647, %v346_v2 }
 0x546   : > { %v359_v11 = vor.u32 1.1754944e-38, %v358_v8  ;;  %vm357_vm13 = vcmp.eq.f32.partialorder %v356_v9, 8.507059e+37 }
 0x54a   : > { %v641_v3 = vpop.eup %640 }
 0x54b   : > { %v348_v4 = vmul.f32 %v641_v3, %v346_v2  ;;  %vm353_vm10 = vweird.f32 %v641_v3 }
 0x54c   : > { %vm354_vm12 = vmor %vm352_vm11, %vm353_vm10 }
 0x54d   : > { %v349_v5 = vsub.f32 1.0, %v348_v4 }
 0x54f   : > { %v350_v6 = vmul.f32 %v641_v3, %v349_v5 }
 0x551   : > { %v351_v7 = vadd.f32 %v641_v3, %v350_v6 }
 0x553   : > { %v355_v10 = vsel %vm354_vm12, %v641_v3, %v351_v7 }
 0x554   : > { %v360_v13 = vsel %vm357_vm13, %v359_v11, %v355_v10 }
 0x555   : > { %v363_v15 = vmul.f32 %v360_v13, %v308_v55 }
 0x5b2   : > { %v366_v12 = vpop.permute.xlu0 %365 }
 0x5b3   : > { %v368_v14 = vmul.f32 %v366_v12, %v360_v13 }
 0x5b5   : > { %370 = vrot.lane.b32.xlu1 %v368_v14, %s789_s18 }
 0x627   : > { %v371_v16 = vpop.permute.xlu1 %370 }
 0x628   : > { %v373_v17 = vadd.f32 %v371_v16, %v363_v15 }
 0x62a   : > { %642 = vtanh.f32 %v373_v17 }
 0x630   : > { %v643_v18 = vpop.eup %642 }
 0x631   : > { %376 = vrot.lane.b32.xlu2 %v643_v18, %s788_s14 }
 0x68b   : > { %v377_v19 = vpop.permute.xlu2 %376 }
 0x68c   : > { %v379_v20 = vmul.f32 %v377_v19, %v360_v13 }
 0x68e   : > { %383 = vrot.lane.b32.xlu0 %v379_v20, %s789_s18 }
 0x700   : > { %v384_v21 = vpop.permute.xlu0 %383 }
 0x701   : > { %549 = vmatmul.msk.f32.vlgmr.msra.gmra.mxu3 %vm184_vm1, %v384_v21 }
 0x784   : > { %v404_v23 = vpop.f32.mrf.mxu3 }
 0x785   : > { %v407_v24 = vadd.f32 %v548_v22, %v404_v23 }
 0x787   : > { %644 = vtanh.f32 %v407_v24  ;;  %v550_v26 = vmul.f32 -1.442695, %v407_v24 }
 0x789   : > { %646 = vpow2.f32 %v550_v26 }
 0x78d   : > { %v645_v25 = vpop.eup %644 }
 0x78e   : > { %430 = vrot.lane.b32.xlu1 %v645_v25, %s788_s14 }
 0x78f   : > { %v647_v27 = vpop.eup %646 }
 0x790   : > { %v411_v28 = vadd.f32 1.0, %v647_v27 }
 0x792   : > { %648 = vrcp.f32 %v411_v28  ;;  %v423_v34 = vand.u32 2147483648, %v411_v28  ;;  %vm417_vm15 = vweird.f32 %v411_v28  ;;  %v421_v35 = vand.u32 2147483647, %v411_v28 }
 0x794   : > { %v424_v37 = vor.u32 1.1754944e-38, %v423_v34  ;;  %vm422_vm2 = vcmp.eq.f32.partialorder %v421_v35, 8.507059e+37 }
 0x798   : > { %v649_v29 = vpop.eup %648 }
 0x799   : > { %v413_v30 = vmul.f32 %v649_v29, %v411_v28  ;;  %vm418_vm14 = vweird.f32 %v649_v29 }
 0x79a   : > { %vm419_vm0 = vmor %vm417_vm15, %vm418_vm14 }
 0x79b   : > { %v414_v31 = vsub.f32 1.0, %v413_v30 }
 0x79d   : > { %v415_v32 = vmul.f32 %v649_v29, %v414_v31 }
 0x79f   : > { %v416_v33 = vadd.f32 %v649_v29, %v415_v32 }
 0x7a1   : > { %v420_v36 = vsel %vm419_vm0, %v649_v29, %v416_v33 }
 0x7a2   : > { %v425_v39 = vsel %vm422_vm2, %v424_v37, %v420_v36 }
 0x7a3   : > { %v428_v41 = vmul.f32 %v425_v39, %v373_v17 }
 0x800   : > { %v431_v38 = vpop.permute.xlu1 %430 }
 0x801   : > { %v433_v40 = vmul.f32 %v431_v38, %v425_v39 }
 0x803   : > { %435 = vrot.lane.b32.xlu2 %v433_v40, %s789_s18 }
 0x85d   : > { %v436_v42 = vpop.permute.xlu2 %435 }
 0x85e   : > { %v438_v43 = vadd.f32 %v436_v42, %v428_v41 }
 0x860   : > { %650 = vtanh.f32 %v438_v43  ;;  %451 = vrot.lane.b32.xlu2 %v438_v43, %s790_s22 }
 0x866   : > { %v651_v44 = vpop.eup %650 }
 0x867   : > { %441 = vrot.lane.b32.xlu0 %v651_v44, %s788_s14 }
 0x8ba   : > { %v452_v45 = vpop.permute.xlu2 %451 }
 0x8bb   : > { %454 = vst.msk [vmem:[#allocation3] sm:$0xff] %vm184_vm1, %v452_v45 }
 0x8d9   : > { %v442_v46 = vpop.permute.xlu0 %441 }
 0x8da   : > { %v444_v47 = vmul.f32 %v442_v46, %v425_v39 }
 0x8dc   : > { %446 = vrot.lane.b32.xlu1 %v444_v47, %s789_s18 }
 0x94b   : > { %458 = sbr.rel (%p551_p1) target bundleno = 2385 (0x951), region = 44 }
 0x94e   : > { %v447_v48 = vpop.permute.xlu1 %446 }
 0x94f   : > { %449 = vst.msk [vmem:[#allocation2] sm:$0xff] %vm184_vm1, %v447_v48 }
 0x950   : > { %459 = vst.msk [vmem:[#allocation9] sm:$0xff] %vm184_vm1, %v447_v48 }
 0x951 PF: > { %p578_p4 = scmp.eq.s32.totalorder %s826_s13, 1  ;;  %s791_s23 = smov [#allocation9]  }
 0x952   : > { %s466_s30 = sshll.u32 %s791_s23, 4  ;;  %s468_s5 = sshll.u32 %s951_s2, 4  ;;  %s467_s30 = int_to_ptr.vmem [resolvable:$true] %s466_s30  ;;  %s469_s5 = int_to_ptr.hbm [resolvable:$true] %s468_s5 }
 0x953   : > { %564 = dma.vmem_to_hbm [thread:$0]  (%p578_p4), %s467_s30, 128, %s469_s5, [#allocation6]  }
 0x954   : > { %765 = dma.done.wait (%p578_p4), [#allocation6], 128  }
 0x955   : > { %767 = vsyncadd (%p578_p4), [#allocation6], 4294967168 }
 0x956 PF: > { %p14_p5 = scmp.ge.s32.totalorder %s851_s21, 4   ;;  %s955_s9 = smov %s774_s10 }
 0x957   : > { %s956_s10 = smov %s778_s11  ;;  %s957_s11 = smov %s864_s26 }
 0x958   : > { %s958_s12 = smov %s851_s21  ;;  %16 = sbr.rel (!%p14_p5) target bundleno = 5 (0x5), region = 80 }
 0x95d   :  { %482 = vsyncpa [#allocation5], 1 }
 0x95e   :  { %484 = vsyncpa [#allocation5 + $0x1], 1 }
 0x95f   :  { %485 = vsyncpa [#allocation8], 1 }
 0x960   :  { %486 = vsyncpa [#allocation6], 1 }
 0x961   :  { %488 = vsyncpa [#allocation6 + $0x1], 1 }

</bundles_post_ra>
